<compile_context>
chip_gen: v5e
topology: v5e:2x2
jax: 0.10.0
libtpu: 0.0.40
codegen_flags: <defaults>
</compile_context>

<pallas_src>
import functools

import jax
import jax.numpy as jnp
from jax.experimental import pallas as pl
from jax.experimental.pallas import tpu as pltpu

LANES = 128
SUBLANES = 8
MAX_TILE_ROWS = 4096            # (4096,128) f32 = 2 MiB block; multiple of 32
_VMEM_LIMIT_BYTES = 32 * 1024 * 1024


def _cdiv(a, b):
    return -(-a // b)


def _num_tensorcores():
    """Number of accumulation partitions: 2 only on multi-TC-per-chip devices."""
    try:
        kind = jax.devices()[0].device_kind.lower()
    except Exception:
        return 1
    return 2 if any(tag in kind for tag in ("v7", "v5p", "v4")) else 1


def _elementwise_loss(x, *, gan_type, target_is_real, is_disc,
                      real_label_val, fake_label_val):
    """Per-element loss value (float32), matching basicsr/PyTorch semantics."""
    if gan_type == "vanilla":
        t = real_label_val if target_is_real else fake_label_val
        # BCEWithLogitsLoss (stable): max(x,0) - x*t + log(1 + exp(-|x|))
        return jnp.maximum(x, 0.0) - x * t + jnp.log1p(jnp.exp(-jnp.abs(x)))
    elif gan_type == "lsgan":
        t = real_label_val if target_is_real else fake_label_val
        d = x - t
        return d * d
    elif gan_type == "wgan":
        return -x if target_is_real else x
    elif gan_type == "wgan_softplus":
        z = -x if target_is_real else x
        # softplus(z) = max(z, 0) + log(1 + exp(-|z|))
        return jnp.maximum(z, 0.0) + jnp.log1p(jnp.exp(-jnp.abs(z)))
    elif gan_type == "hinge":
        if is_disc:
            z = -x if target_is_real else x
            return jnp.maximum(1.0 + z, 0.0)   # ReLU(1 + z)
        else:
            return -x
    else:
        raise NotImplementedError(f"GAN type {gan_type} is not implemented.")


def _gan_loss_kernel(rows_ref, x_ref, out_ref, *, gan_type, target_is_real,
                     is_disc, real_label_val, fake_label_val,
                     tile_rows, tiles_per_core):
    c = pl.program_id(0)          # partition ("parallel" axis)
    t = pl.program_id(1)          # reduction step ("arbitrary" axis)

    # The (8, 128) output block stays VMEM-resident across the t axis; zero it
    # at the first step of each partition.
    @pl.when(t == 0)
    def _():
        out_ref[...] = jnp.zeros_like(out_ref)

    rows_valid = rows_ref[0]
    tile_start = (c * tiles_per_core + t) * tile_rows

    def _accumulate(needs_mask):
        x = x_ref[...].astype(jnp.float32)
        # NOTE: for bf16 vanilla / wgan_softplus on v6e/v7x the exp+log1p can
        # become EUP-bound; bf16 transcendentals would ~double EUP rate but
        # change numerics slightly, so we keep f32 here.
        vals = _elementwise_loss(
            x,
            gan_type=gan_type,
            target_is_real=target_is_real,
            is_disc=is_disc,
            real_label_val=real_label_val,
            fake_label_val=fake_label_val,
        )
        if needs_mask:
            rid = jax.lax.broadcasted_iota(jnp.int32, vals.shape, 0) + tile_start
            vals = jnp.where(rid < rows_valid, vals, 0.0)
        # (tile_rows, 128) -> (8, 128) per-lane partial sums: pure VPU vreg
        # adds, no cross-lane reduce and no scalar RMW in the inner loop.
        out_ref[...] += vals.reshape(-1, SUBLANES, LANES).sum(axis=0)

    is_full = tile_start + tile_rows <= rows_valid
    has_rows = tile_start < rows_valid

    # Full blocks are mask-free; partial edge blocks take the masked path;
    # dummy/overhang blocks (past the valid rows) skip compute entirely.
    @pl.when(is_full)
    def _():
        _accumulate(False)

    @pl.when(jnp.logical_and(jnp.logical_not(is_full), has_rows))
    def _():
        _accumulate(True)


class GANLossPallas:
    """JAX/Pallas re-implementation of basicsr GANLoss forward."""

    def __init__(self, gan_type, real_label_val=1.0, fake_label_val=0.0,
                 loss_weight=1.0):
        if gan_type not in ("vanilla", "lsgan", "wgan", "wgan_softplus", "hinge"):
            raise NotImplementedError(f"GAN type {gan_type} is not implemented.")
        self.gan_type = gan_type
        self.real_label_val = float(real_label_val)
        self.fake_label_val = float(fake_label_val)
        self.loss_weight = float(loss_weight)

    def _elementwise_kwargs(self, target_is_real, is_disc):
        return dict(
            gan_type=self.gan_type,
            target_is_real=bool(target_is_real),
            is_disc=bool(is_disc),
            real_label_val=self.real_label_val,
            fake_label_val=self.fake_label_val,
        )

    def _kernel_sum(self, x2d, ew_kwargs):
        rows = x2d.shape[0]
        packing = max(1, 4 // x2d.dtype.itemsize)   # f32:1, bf16:2, int8/fp8:4
        row_align = SUBLANES * packing
        num_partials = _num_tensorcores()

        # tile_rows is a multiple of the dtype's packed-sublane tile, so every
        # full block is layout-aligned (MAX_TILE_ROWS=4096 is a multiple of 32,
        # covering 8/16/32-row packing).  Caller guarantees rows >= row_align.
        tile_rows = min(MAX_TILE_ROWS, (rows // row_align) * row_align)
        n_tiles = _cdiv(rows, tile_rows)
        tiles_per_core = _cdiv(n_tiles, num_partials)

        def x_index_map(c, t, rows_smem):
            # Clamp so partitions running past the last block re-read a valid
            # block; those dummy steps skip compute inside the kernel.
            g = c * tiles_per_core + t
            return (jnp.minimum(g, n_tiles - 1), 0)

        def out_index_map(c, t, rows_smem):
            return (c, 0)

        kernel = functools.partial(
            _gan_loss_kernel,
            tile_rows=tile_rows,
            tiles_per_core=tiles_per_core,
            **ew_kwargs,
        )

        numel = rows * LANES
        uses_eup = ew_kwargs["gan_type"] in ("vanilla", "wgan_softplus")
        cost = pl.CostEstimate(
            flops=6 * numel,
            transcendentals=(2 * numel) if uses_eup else 0,
            bytes_accessed=numel * x2d.dtype.itemsize
                           + num_partials * SUBLANES * LANES * 4,
        )

        partials = pl.pallas_call(
            kernel,
            out_shape=jax.ShapeDtypeStruct(
                (num_partials * SUBLANES, LANES), jnp.float32),
            grid_spec=pltpu.PrefetchScalarGridSpec(
                num_scalar_prefetch=1,
                grid=(num_partials, tiles_per_core),
                in_specs=[pl.BlockSpec((tile_rows, LANES), x_index_map)],
                out_specs=pl.BlockSpec((SUBLANES, LANES), out_index_map),
            ),
            compiler_params=pltpu.CompilerParams(
                dimension_semantics=("parallel", "arbitrary"),
                vmem_limit_bytes=_VMEM_LIMIT_BYTES),
            cost_estimate=cost,
        )(jnp.array([rows], dtype=jnp.int32), x2d)

        # Final cross-lane reduction of the per-partition per-lane partials.
        return jnp.sum(partials)

    def __call__(self, x, target_is_real, is_disc=False):
        total = int(x.size)
        ew_kwargs = self._elementwise_kwargs(target_is_real, is_disc)

        x_flat = jnp.ravel(x)          # keep source dtype; cast per-tile in-kernel
        rows = total // LANES
        packing = max(1, 4 // x_flat.dtype.itemsize)
        row_align = SUBLANES * packing

        if rows >= row_align:
            aligned = rows * LANES
            if aligned == total:
                x2d = x_flat.reshape(rows, LANES)      # free bitcast reshape
                tail = None
            else:
                # TODO(synk): x_flat[:aligned] is an XLA slice that materializes
                # a full HBM copy before pallas_call for non-128-aligned totals;
                # a 1-D streamed kernel would avoid the extra traffic.
                x2d = x_flat[:aligned].reshape(rows, LANES)
                tail = x_flat[aligned:]
            total_sum = self._kernel_sum(x2d, ew_kwargs)
            if tail is not None:
                total_sum = total_sum + jnp.sum(
                    _elementwise_loss(tail.astype(jnp.float32), **ew_kwargs))
        else:
            # Tiny input (< one packed tile): not worth a kernel launch.
            total_sum = jnp.sum(
                _elementwise_loss(x_flat.astype(jnp.float32), **ew_kwargs))

        loss = total_sum / jnp.float32(total)
        return loss if is_disc else loss * self.loss_weight


def _reference(x, gan_type, target_is_real, is_disc, real_val, fake_val, w):
    vals = _elementwise_loss(
        x.astype(jnp.float32), gan_type=gan_type, target_is_real=target_is_real,
        is_disc=is_disc, real_label_val=real_val, fake_label_val=fake_val)
    loss = jnp.mean(vals)
    return loss if is_disc else loss * w


if __name__ == "__main__":
    key = jax.random.PRNGKey(0)
    k1, k2 = jax.random.split(key)

    # Discriminator-style prediction map, NCHW (lane-aligned, f32).
    x_main = jax.random.normal(k1, (2, 4, 16, 16), dtype=jnp.float32)
    # bf16 + non-lane-aligned shape: exercises the masked edge block and the
    # JAX-side tail sum.
    x_bf16 = jax.random.normal(
        k2, (3, 3, 20, 24), dtype=jnp.float32).astype(jnp.bfloat16)

    ok = True
    for x in (x_main, x_bf16):
        for gan_type in ("vanilla", "lsgan", "wgan", "wgan_softplus", "hinge"):
            mod = GANLossPallas(gan_type, real_label_val=1.0,
                                fake_label_val=0.0, loss_weight=0.5)
            for target_is_real in (True, False):
                for is_disc in (True, False):
                    out = jax.block_until_ready(mod(x, target_is_real, is_disc))
                    ref = jax.block_until_ready(
                        _reference(x, gan_type, target_is_real, is_disc,
                                   1.0, 0.0, 0.5))
                    if not jnp.allclose(out, ref, rtol=1e-5, atol=1e-5):
                        ok = False
                        print(f"MISMATCH dtype={x.dtype} shape={x.shape} "
                              f"{gan_type} real={target_is_real} "
                              f"disc={is_disc}: {out} vs {ref}")

    if ok:
        print("KERNEL_OK")
</pallas_src>

<mosaic_0001>
module attributes {stable_mosaic.version = 11 : i64} {
  func.func @_gan_loss_kernel(%arg0: i32, %arg1: i32, %arg2: memref<1xi32, #tpu.memory_space<smem>>, %arg3: memref<16x128xf32, #tpu.memory_space<vmem>>, %arg4: memref<8x128xf32, #tpu.memory_space<vmem>>) attributes {dimension_semantics = [#tpu.dimension_semantics<parallel>, #tpu.dimension_semantics<arbitrary>], iteration_bounds = array<i64: 1, 1>, scalar_prefetch = 1 : i64, scratch_operands = 0 : i64, tpu.core_type = #tpu.core_type<tc>, window_params = [{transform_indices = @transform_0, window_bounds = array<i64: 16, 128>}, {transform_indices = @transform_1, window_bounds = array<i64: 8, 128>}]} {
    %c0_i32 = arith.constant 0 : i32
    %0 = arith.cmpi eq, %arg1, %c0_i32 : i32
    %1 = arith.extui %0 : i1 to i32
    %c0_i32_0 = arith.constant 0 : i32
    %2 = arith.cmpi ne, %1, %c0_i32_0 : i32
    scf.if %2 {
      %cst = arith.constant 0.000000e+00 : f32
      %16 = vector.broadcast %cst : f32 to vector<8x128xf32>
      %c0_4 = arith.constant 0 : index
      %c0_5 = arith.constant 0 : index
      %17 = vector.load %arg4[%c0_4, %c0_5] : memref<8x128xf32, #tpu.memory_space<vmem>>, vector<8x128xf32>
      tpu.vector_store %arg4[%c0_4, %c0_5], %16 {strides = array<i32>} : memref<8x128xf32, #tpu.memory_space<vmem>>, vector<8x128xf32>,
    } else {
    }
    %c0 = arith.constant 0 : index
    %3 = memref.load %arg2[%c0] : memref<1xi32, #tpu.memory_space<smem>>
    %c1_i32 = arith.constant 1 : i32
    %4 = arith.muli %arg0, %c1_i32 : i32
    %5 = arith.addi %4, %arg1 : i32
    %c16_i32 = arith.constant 16 : i32
    %6 = arith.muli %5, %c16_i32 : i32
    %c16_i32_1 = arith.constant 16 : i32
    %7 = arith.addi %6, %c16_i32_1 : i32
    %8 = arith.cmpi sle, %7, %3 : i32
    %9 = arith.cmpi slt, %6, %3 : i32
    %10 = arith.extui %8 : i1 to i32
    %c0_i32_2 = arith.constant 0 : i32
    %11 = arith.cmpi ne, %10, %c0_i32_2 : i32
    scf.if %11 {
      %c0_4 = arith.constant 0 : index
      %c0_5 = arith.constant 0 : index
      %16 = vector.load %arg3[%c0_4, %c0_5] : memref<16x128xf32, #tpu.memory_space<vmem>>, vector<16x128xf32>
      %cst = arith.constant 0.000000e+00 : f32
      %17 = vector.broadcast %cst : f32 to vector<16x128xf32>
      %18 = arith.maximumf %16, %17 : vector<16x128xf32>
      %cst_6 = arith.constant 1.000000e+00 : f32
      %19 = vector.broadcast %cst_6 : f32 to vector<16x128xf32>
      %20 = arith.mulf %16, %19 : vector<16x128xf32>
      %21 = arith.subf %18, %20 : vector<16x128xf32>
      %22 = math.absf %16 : vector<16x128xf32>
      %cst_7 = arith.constant 0.000000e+00 : f32
      %23 = vector.broadcast %cst_7 : f32 to vector<16x128xf32>
      %24 = arith.subf %23, %22 : vector<16x128xf32>
      %25 = math.exp %24 : vector<16x128xf32>
      %26 = math.log1p %25 : vector<16x128xf32>
      %27 = arith.addf %21, %26 : vector<16x128xf32>
      %c0_8 = arith.constant 0 : index
      %c0_9 = arith.constant 0 : index
      %28 = vector.load %arg4[%c0_8, %c0_9] : memref<8x128xf32, #tpu.memory_space<vmem>>, vector<8x128xf32>
      %29 = vector.shape_cast %27 : vector<16x128xf32> to vector<2x8x128xf32>
      %cst_10 = arith.constant dense<0.000000e+00> : vector<8x128xf32>
      %30 = vector.multi_reduction <add>, %29, %cst_10 [0] : vector<2x8x128xf32> to vector<8x128xf32>
      %31 = arith.addf %28, %30 : vector<8x128xf32>
      %c0_11 = arith.constant 0 : index
      %c0_12 = arith.constant 0 : index
      %32 = vector.load %arg4[%c0_11, %c0_12] : memref<8x128xf32, #tpu.memory_space<vmem>>, vector<8x128xf32>
      tpu.vector_store %arg4[%c0_11, %c0_12], %31 {strides = array<i32>} : memref<8x128xf32, #tpu.memory_space<vmem>>, vector<8x128xf32>,
    } else {
    }
    %true = arith.constant true
    %12 = arith.xori %8, %true : i1
    %13 = arith.andi %12, %9 : i1
    %14 = arith.extui %13 : i1 to i32
    %c0_i32_3 = arith.constant 0 : i32
    %15 = arith.cmpi ne, %14, %c0_i32_3 : i32
    scf.if %15 {
      %c0_4 = arith.constant 0 : index
      %c0_5 = arith.constant 0 : index
      %16 = vector.load %arg3[%c0_4, %c0_5] : memref<16x128xf32, #tpu.memory_space<vmem>>, vector<16x128xf32>
      %cst = arith.constant 0.000000e+00 : f32
      %17 = vector.broadcast %cst : f32 to vector<16x128xf32>
      %18 = arith.maximumf %16, %17 : vector<16x128xf32>
      %cst_6 = arith.constant 1.000000e+00 : f32
      %19 = vector.broadcast %cst_6 : f32 to vector<16x128xf32>
      %20 = arith.mulf %16, %19 : vector<16x128xf32>
      %21 = arith.subf %18, %20 : vector<16x128xf32>
      %22 = math.absf %16 : vector<16x128xf32>
      %cst_7 = arith.constant 0.000000e+00 : f32
      %23 = vector.broadcast %cst_7 : f32 to vector<16x128xf32>
      %24 = arith.subf %23, %22 : vector<16x128xf32>
      %25 = math.exp %24 : vector<16x128xf32>
      %26 = math.log1p %25 : vector<16x128xf32>
      %27 = arith.addf %21, %26 : vector<16x128xf32>
      %28 = tpu.iota {dimensions = array<i32: 0>} : vector<16x128xi32>
      %29 = vector.broadcast %6 : i32 to vector<16x128xi32>
      %30 = arith.addi %28, %29 : vector<16x128xi32>
      %31 = vector.broadcast %3 : i32 to vector<16x128xi32>
      %32 = arith.cmpi slt, %30, %31 : vector<16x128xi32>
      %cst_8 = arith.constant 0.000000e+00 : f32
      %33 = vector.broadcast %cst_8 : f32 to vector<16x128xf32>
      %34 = arith.select %32, %27, %33 : vector<16x128xi1>, vector<16x128xf32>
      %c0_9 = arith.constant 0 : index
      %c0_10 = arith.constant 0 : index
      %35 = vector.load %arg4[%c0_9, %c0_10] : memref<8x128xf32, #tpu.memory_space<vmem>>, vector<8x128xf32>
      %36 = vector.shape_cast %34 : vector<16x128xf32> to vector<2x8x128xf32>
      %cst_11 = arith.constant dense<0.000000e+00> : vector<8x128xf32>
      %37 = vector.multi_reduction <add>, %36, %cst_11 [0] : vector<2x8x128xf32> to vector<8x128xf32>
      %38 = arith.addf %35, %37 : vector<8x128xf32>
      %c0_12 = arith.constant 0 : index
      %c0_13 = arith.constant 0 : index
      %39 = vector.load %arg4[%c0_12, %c0_13] : memref<8x128xf32, #tpu.memory_space<vmem>>, vector<8x128xf32>
      tpu.vector_store %arg4[%c0_12, %c0_13], %38 {strides = array<i32>} : memref<8x128xf32, #tpu.memory_space<vmem>>, vector<8x128xf32>,
    } else {
    }
    return
  }
  func.func @transform_0(%arg0: i32, %arg1: i32, %arg2: memref<1xi32, #tpu.memory_space<smem>>) -> (i32, i32) {
    %c1_i32 = arith.constant 1 : i32
    %0 = arith.muli %arg0, %c1_i32 : i32
    %1 = arith.addi %0, %arg1 : i32
    %c0_i32 = arith.constant 0 : i32
    %2 = arith.minsi %1, %c0_i32 : i32
    %c0_i32_0 = arith.constant 0 : i32
    %c0_i32_1 = arith.constant 0 : i32
    return %2, %c0_i32_0 : i32, i32
  }
  func.func @transform_1(%arg0: i32, %arg1: i32, %arg2: memref<1xi32, #tpu.memory_space<smem>>) -> (i32, i32) {
    %c0_i32 = arith.constant 0 : i32
    %c0_i32_0 = arith.constant 0 : i32
    return %arg0, %c0_i32 : i32, i32
  }
}

</mosaic_0001>

<bundles_post_ra>
// kernel: tpu_custom_call.1
= control target key start
LH: loop header
LB: loop body
LE: loop exit
PB: predicated region body
PF: predicated region fallthrough
CT: control target
= control target key end

     0   :  { %8 = vsyncpa [#allocation5], 0  ;;  %s286_s0 = inlined_call_operand.<no memory space> [shape: s32[1], index: 0, kind: input, shape index: {}]   ;;  %s287_s1 = inlined_call_operand.hbm [shape: f32[16,128], index: 1, kind: input, shape index: {}]   ;;  %s288_s2 = inlined_call_operand.hbm [shape: f32[8,128], index: 2, kind: output, shape index: {}]  }
   0x1   :  { %9 = vsyncpa [#allocation6], 0  ;;  %s20_s11 = sshll.u32 %s287_s1, 4  ;;  %s239_s12 = smov [#allocation4]   ;;  %s21_s11 = int_to_ptr.hbm [resolvable:$true] %s20_s11 }
   0x2   :  { %s22_s13 = sshll.u32 %s239_s12, 4  ;;  %s240_s14 = smov 128   ;;  %s23_s13 = int_to_ptr.vmem [resolvable:$true] %s22_s13 }
   0x3   :  { %s241_s15 = smov 8  }
   0x4   :  { %28 = dma.hbm_to_vmem [thread:$0]  %s21_s11, 256, %s23_s13, [#allocation5], %s240_s14, %s240_s14, %s241_s15  }
   0x5   :  { %235 = dma.done.wait [#allocation5], 256  }
   0x6   :  { %236 = vsyncadd [#allocation5], 4294967040  ;;  %p163_p0 = scmp.gt.s32.totalorder %s286_s0, 0  ;;  %v242_v0 = vmov 0.0   ;;  %p164_p1 = scmp.lt.s32.totalorder %s286_s0, 16 }
   0x7   :  { %41 = vst [vmem:[#allocation7] sm:$0xff] %v242_v0 }
   0x8   :  { %50 = sbr.rel (%p164_p1) target bundleno = 47 (0x2f), region = 17 }
   0xd   :  { %v51_v1 = vld [vmem:[#allocation4] sm:$0xff]  ;;  %v52_v2 = vld [vmem:[#allocation4 + $0x8] sm:$0xff] }
   0xe   :  { %v57_v3 = vand.u32 2147483647, %v51_v1  ;;  %v58_v4 = vand.u32 2147483647, %v52_v2  ;;  %v53_v16 = vmax.f32 %v51_v1, 0.0  ;;  %v54_v19 = vmax.f32 %v52_v2, 0.0 }
   0xf   :  { %v85_v33 = vld [vmem:[#allocation7] sm:$0xff] }
  0x10   :  { %v59_v5 = vsub.f32 0.0, %v57_v3  ;;  %v60_v6 = vsub.f32 0.0, %v58_v4  ;;  %v55_v23 = vsub.f32 %v53_v16, %v51_v1  ;;  %v56_v26 = vsub.f32 %v54_v19, %v52_v2 }
  0x12   :  { %v61_v7 = vmul.f32 1.442695, %v59_v5  ;;  %v63_v8 = vmul.f32 1.442695, %v60_v6 }
  0x14   :  { %171 = vpow2.f32 %v61_v7 }
  0x15   :  { %173 = vpow2.f32 %v63_v8 }
  0x1a   :  { %v172_v9 = vpop.eup %171 }
  0x1b   :  { %v174_v10 = vpop.eup %173  ;;  %v65_v11 = vadd.f32 1.0, %v172_v9  ;;  %v68_v12 = vmul.f32 -0.5, %v172_v9  ;;  %v71_v17 = vand.u32 2147483647, %v172_v9 }
  0x1c   :  { %v74_v13 = vadd.f32 1.0, %v174_v10  ;;  %v77_v14 = vmul.f32 -0.5, %v174_v10  ;;  %v80_v20 = vand.u32 2147483647, %v174_v10 }
  0x1d   :  { %175 = vlog2.f32 %v65_v11  ;;  %v69_v15 = vadd.f32 1.0, %v68_v12  ;;  %vm72_vm0 = vcmp.lt.f32.partialorder %v71_v17, 0.0004427343 }
  0x1e   :  { %177 = vlog2.f32 %v74_v13  ;;  %v78_v18 = vadd.f32 1.0, %v77_v14  ;;  %vm81_vm1 = vcmp.lt.f32.partialorder %v80_v20, 0.0004427343 }
  0x1f   :  { %v70_v21 = vmul.f32 %v172_v9, %v69_v15 }
  0x20   :  { %v79_v24 = vmul.f32 %v174_v10, %v78_v18 }
  0x23   :  { %v176_v22 = vpop.eup %175 }
  0x24   :  { %v178_v25 = vpop.eup %177  ;;  %v67_v27 = vmul.f32 0.6931472, %v176_v22 }
  0x25   :  { %v76_v28 = vmul.f32 0.6931472, %v178_v25 }
  0x26   :  { %v73_v29 = vsel %vm72_vm0, %v70_v21, %v67_v27 }
  0x27   :  { %v82_v30 = vsel %vm81_vm1, %v79_v24, %v76_v28  ;;  %v83_v31 = vadd.f32 %v73_v29, %v55_v23 }
  0x28   :  { %v84_v32 = vadd.f32 %v82_v30, %v56_v26 }
  0x2a   :  { %v86_v34 = vadd.f32 %v84_v32, %v83_v31 }
  0x2c   :  { %v87_v35 = vadd.f32 %v86_v34, %v85_v33 }
  0x2e   :  { %88 = vst [vmem:[#allocation7] sm:$0xff] %v87_v35 }
  0x2f PF:  { %p90_p2 = pnand %p164_p1, %p163_p0 }
  0x31   :  { %93 = sbr.rel (%p90_p2) target bundleno = 89 (0x59), region = 21 }
  0x36   :  { %v94_v36 = vld [vmem:[#allocation4] sm:$0xff]  ;;  %v95_v37 = vld [vmem:[#allocation4 + $0x8] sm:$0xff]  ;;  %v128_v48 = vlaneseq  ;;  %v134_v59 = vstv %s286_s0  ;;  %v139_v10 = vld [vmem:[#allocation7] sm:$0xff] }
  0x37   :  { %v100_v38 = vand.u32 2147483647, %v94_v36  ;;  %v101_v39 = vand.u32 2147483647, %v95_v37  ;;  %v96_v52 = vmax.f32 %v94_v36, 0.0  ;;  %v97_v56 = vmax.f32 %v95_v37, 0.0 }
  0x38   :  { %v129_v55 = vshrl.u32 %v128_v48, 7 }
  0x39   :  { %v102_v40 = vsub.f32 0.0, %v100_v38  ;;  %v103_v41 = vsub.f32 0.0, %v101_v39  ;;  %v98_v61 = vsub.f32 %v96_v52, %v94_v36  ;;  %v99_v1 = vsub.f32 %v97_v56, %v95_v37 }
  0x3a   :  { %v130_v63 = vadd.s32 8, %v129_v55  ;;  %vm135_vm4 = vcmp.lt.s32.totalorder %v129_v55, %v134_v59 }
  0x3b   :  { %v104_v42 = vmul.f32 1.442695, %v102_v40  ;;  %v106_v43 = vmul.f32 1.442695, %v103_v41 }
  0x3c   :  { %vm136_vm5 = vcmp.lt.s32.totalorder %v130_v63, %v134_v59 }
  0x3d   :  { %179 = vpow2.f32 %v104_v42 }
  0x3e   :  { %181 = vpow2.f32 %v106_v43 }
  0x43   :  { %v180_v44 = vpop.eup %179 }
  0x44   :  { %v182_v45 = vpop.eup %181  ;;  %v108_v46 = vadd.f32 1.0, %v180_v44  ;;  %v111_v47 = vmul.f32 -0.5, %v180_v44  ;;  %v114_v53 = vand.u32 2147483647, %v180_v44 }
  0x45   :  { %v117_v49 = vadd.f32 1.0, %v182_v45  ;;  %v120_v50 = vmul.f32 -0.5, %v182_v45  ;;  %v123_v57 = vand.u32 2147483647, %v182_v45 }
  0x46   :  { %183 = vlog2.f32 %v108_v46  ;;  %v112_v51 = vadd.f32 1.0, %v111_v47  ;;  %vm115_vm2 = vcmp.lt.f32.partialorder %v114_v53, 0.0004427343 }
  0x47   :  { %185 = vlog2.f32 %v117_v49  ;;  %v121_v54 = vadd.f32 1.0, %v120_v50  ;;  %vm124_vm3 = vcmp.lt.f32.partialorder %v123_v57, 0.0004427343 }
  0x48   :  { %v113_v58 = vmul.f32 %v180_v44, %v112_v51 }
  0x49   :  { %v122_v62 = vmul.f32 %v182_v45, %v121_v54 }
  0x4c   :  { %v184_v60 = vpop.eup %183 }
  0x4d   :  { %v186_v0 = vpop.eup %185  ;;  %v110_v2 = vmul.f32 0.6931472, %v184_v60 }
  0x4e   :  { %v119_v3 = vmul.f32 0.6931472, %v186_v0 }
  0x4f   :  { %v116_v4 = vsel %vm115_vm2, %v113_v58, %v110_v2 }
  0x50   :  { %v125_v5 = vsel %vm124_vm3, %v122_v62, %v119_v3  ;;  %v126_v6 = vadd.f32 %v116_v4, %v98_v61 }
  0x51   :  { %v127_v7 = vadd.f32 %v125_v5, %v99_v1 }
  0x52   :  { %v137_v8 = vsel %vm135_vm4, %v126_v6, 0.0 }
  0x53   :  { %v138_v9 = vsel %vm136_vm5, %v127_v7, 0.0 }
  0x54   :  { %v140_v11 = vadd.f32 %v138_v9, %v137_v8 }
  0x56   :  { %v141_v12 = vadd.f32 %v140_v11, %v139_v10 }
  0x58   :  { %142 = vst [vmem:[#allocation7] sm:$0xff] %v141_v12 }
  0x59 PF:  { %s150_s28 = sshll.u32 %s288_s2, 4  ;;  %s243_s29 = smov [#allocation7]   ;;  %s151_s28 = int_to_ptr.hbm [resolvable:$true] %s150_s28 }
  0x5a   :  { %s148_s30 = sshll.u32 %s243_s29, 4  ;;  %s149_s30 = int_to_ptr.vmem [resolvable:$true] %s148_s30 }
  0x5b   :  { %153 = dma.vmem_to_hbm [thread:$0]  %s149_s30, 128, %s151_s28, [#allocation6]  }
  0x5c   :  { %237 = dma.done.wait [#allocation6], 128  }
  0x5d   :  { %238 = vsyncadd [#allocation6], 4294967168 }
  0x5e   :  { %158 = vsyncpa [#allocation5], 1 }
  0x5f   :  { %159 = vsyncpa [#allocation6], 1 }

</bundles_post_ra>
